<compile_context>
chip_gen: v7x
topology: tpu7x:2x2x1
jax: 0.10.0
libtpu: 0.0.40
codegen_flags: <defaults>
</compile_context>

<pallas_src>
import numpy as np
import jax
import jax.numpy as jnp
from jax.experimental import pallas as pl
from jax.experimental.pallas import tpu as pltpu


def _round_up(x, m):
    return -(-x // m) * m


def _vmem_capacity_bytes():
    """Physical VMEM per TensorCore, with a conservative (v7x-sized) fallback."""
    try:
        cap = int(pltpu.get_tpu_info().vmem_capacity_bytes)
        if cap >= 16 * 2**20:
            return cap
    except Exception:
        pass
    return 64 * 2**20


def _make_kernel(num_fields, num_pairs, padded_pairs):
    F, P, P_pad = num_fields, num_pairs, padded_pairs

    def kernel(x_ref, o_ref):
        # x_ref: (TB, F, D) block in its native dtype.  Single f32 upcast.
        xb = x_ref[...].astype(jnp.float32)
        # Pairs (f, j) with j > f are contiguous in p (row-major over f), so
        # each per-f row of inner products lands in a contiguous slice of the
        # output -- no selection tensor / gather matmul needed.  All compute is
        # VPU broadcast-multiply + reduce; the MXU is not involved.
        pieces = []
        for f in range(F - 1):
            prod = xb[:, f + 1:, :] * xb[:, f:f + 1, :]      # (TB, F-1-f, D)
            pieces.append(jnp.sum(prod, axis=-1))            # (TB, F-1-f) f32
        out = pieces[0] if len(pieces) == 1 else jnp.concatenate(pieces, axis=-1)
        if P_pad > P:  # zero the lane padding so the block store is fully dense
            out = jnp.concatenate(
                [out, jnp.zeros((out.shape[0], P_pad - P), out.dtype)], axis=-1)
        o_ref[...] = out.astype(o_ref.dtype)

    return kernel


def inner_product_network_loop(x, num_fields, *, max_block_batch=2048,
                               cast_to_bf16=False):
    """Pallas implementation of InnerProductNetworkLoop.forward."""
    B, F, D = x.shape
    assert F == num_fields and F >= 2
    P = F * (F - 1) // 2
    P_pad = _round_up(P, 128)          # lane-dense pair axis for the output
    out_dtype = x.dtype                # the module returns x's dtype

    if cast_to_bf16 and x.dtype == jnp.float32:
        # Optional HBM-bandwidth optimization (perf review item 4).  Off by
        # default so the kernel reproduces f32 numerics exactly.
        x = x.astype(jnp.bfloat16)

    in_itemsize = x.dtype.itemsize
    out_itemsize = out_dtype.itemsize

    # --- per-batch-row VMEM estimate (sublane/lane padded) -------------------
    f_pad, d_pad = _round_up(F, 8), _round_up(D, 128)
    in_row = f_pad * d_pad * in_itemsize               # one x-block row
    out_row = P_pad * out_itemsize                     # one output-block row
    work_row = 2 * f_pad * d_pad * 4 + 2 * P_pad * 4   # f32 upcast + product + acc
    per_row = 2 * in_row + 2 * out_row + work_row      # double-buffered in/out

    vmem_cap = _vmem_capacity_bytes()
    budget = min(vmem_cap // 2, 48 * 2**20)
    tb_fit = max(8, (budget // per_row) // 8 * 8)

    # --- batch tile: large enough to amortize per-step overhead, fits VMEM,
    # and always >= 2 grid steps so both v7x TensorCores get work ------------
    if B <= 8:
        TB = B
    else:
        TB = min(max_block_batch, tb_fit, _round_up(-(-B // 2), 8))
        TB = max(8, (TB // 8) * 8)
        if TB >= B:
            TB = B
    num_blocks = pl.cdiv(B, TB)        # ragged last block; no wrapper-side pad

    est = TB * per_row
    vmem_limit = int(min(vmem_cap * 9 // 10, max(32 * 2**20, 2 * est)))

    cost = pl.CostEstimate(
        flops=2 * B * P * D,
        transcendentals=0,
        bytes_accessed=B * F * D * in_itemsize + B * P_pad * out_itemsize,
    )

    out = pl.pallas_call(
        _make_kernel(F, P, P_pad),
        out_shape=jax.ShapeDtypeStruct((B, P_pad), out_dtype),
        grid_spec=pltpu.PrefetchScalarGridSpec(
            num_scalar_prefetch=0,
            grid=(num_blocks,),
            in_specs=[pl.BlockSpec((TB, F, D), lambda b: (b, 0, 0))],
            out_specs=pl.BlockSpec((TB, P_pad), lambda b: (b, 0)),
        ),
        compiler_params=pltpu.CompilerParams(
            dimension_semantics=("parallel",),
            vmem_limit_bytes=vmem_limit,
        ),
        cost_estimate=cost,
    )(x)

    # Drop the lane padding of the pair axis.
    return out[:, :P]


def _reference(x, num_fields):
    row, col = [], []
    for i in range(num_fields - 1):
        for j in range(i + 1, num_fields):
            row.append(i)
            col.append(j)
    return jnp.sum(x[:, jnp.array(row)] * x[:, jnp.array(col)], axis=2)


if __name__ == "__main__":
    key = jax.random.PRNGKey(0)

    # Primary check at small shapes implied by the module.
    batch, num_fields, embed_dim = 16, 4, 16
    x = jax.random.normal(key, (batch, num_fields, embed_dim), dtype=jnp.float32)
    out = jax.block_until_ready(inner_product_network_loop(x, num_fields))
    ref = jax.block_until_ready(_reference(x, num_fields))
    assert out.shape == (batch, num_fields * (num_fields - 1) // 2)
    np.testing.assert_allclose(np.asarray(out), np.asarray(ref), rtol=1e-5, atol=1e-5)

    # Ragged-batch check: exercises the cdiv grid / no-wrapper-pad path.
    x2 = jax.random.normal(jax.random.PRNGKey(1), (13, 5, 8), dtype=jnp.float32)
    out2 = jax.block_until_ready(inner_product_network_loop(x2, 5))
    ref2 = jax.block_until_ready(_reference(x2, 5))
    np.testing.assert_allclose(np.asarray(out2), np.asarray(ref2), rtol=1e-5, atol=1e-5)

    print("KERNEL_OK")
</pallas_src>

<mosaic_0001>
module attributes {stable_mosaic.version = 11 : i64} {
  func.func @kernel(%arg0: i32, %arg1: memref<8x4x16xf32, #tpu.memory_space<vmem>>, %arg2: memref<8x128xf32, #tpu.memory_space<vmem>>) attributes {dimension_semantics = [#tpu.dimension_semantics<parallel>], iteration_bounds = array<i64: 2>, scalar_prefetch = 0 : i64, scratch_operands = 0 : i64, tpu.core_type = #tpu.core_type<tc>, window_params = [{transform_indices = @transform_0, window_bounds = array<i64: 8, 4, 16>}, {transform_indices = @transform_1, window_bounds = array<i64: 8, 128>}]} {
    %c0 = arith.constant 0 : index
    %c0_0 = arith.constant 0 : index
    %c0_1 = arith.constant 0 : index
    %0 = vector.load %arg1[%c0, %c0_0, %c0_1] : memref<8x4x16xf32, #tpu.memory_space<vmem>>, vector<8x4x16xf32>
    %1 = vector.extract_strided_slice %0 {offsets = [0, 1, 0], sizes = [8, 3, 16], strides = [1, 1, 1]} : vector<8x4x16xf32> to vector<8x3x16xf32>
    %2 = vector.extract_strided_slice %0 {offsets = [0, 0, 0], sizes = [8, 1, 16], strides = [1, 1, 1]} : vector<8x4x16xf32> to vector<8x1x16xf32>
    %3 = vector.broadcast %2 : vector<8x1x16xf32> to vector<8x3x16xf32>
    %4 = arith.mulf %1, %3 : vector<8x3x16xf32>
    %cst = arith.constant dense<0.000000e+00> : vector<8x3xf32>
    %5 = vector.multi_reduction <add>, %4, %cst [2] : vector<8x3x16xf32> to vector<8x3xf32>
    %6 = vector.extract_strided_slice %0 {offsets = [0, 2, 0], sizes = [8, 2, 16], strides = [1, 1, 1]} : vector<8x4x16xf32> to vector<8x2x16xf32>
    %7 = vector.extract_strided_slice %0 {offsets = [0, 1, 0], sizes = [8, 1, 16], strides = [1, 1, 1]} : vector<8x4x16xf32> to vector<8x1x16xf32>
    %8 = vector.broadcast %7 : vector<8x1x16xf32> to vector<8x2x16xf32>
    %9 = arith.mulf %6, %8 : vector<8x2x16xf32>
    %cst_2 = arith.constant dense<0.000000e+00> : vector<8x2xf32>
    %10 = vector.multi_reduction <add>, %9, %cst_2 [2] : vector<8x2x16xf32> to vector<8x2xf32>
    %11 = vector.extract_strided_slice %0 {offsets = [0, 3, 0], sizes = [8, 1, 16], strides = [1, 1, 1]} : vector<8x4x16xf32> to vector<8x1x16xf32>
    %12 = vector.extract_strided_slice %0 {offsets = [0, 2, 0], sizes = [8, 1, 16], strides = [1, 1, 1]} : vector<8x4x16xf32> to vector<8x1x16xf32>
    %13 = arith.mulf %11, %12 : vector<8x1x16xf32>
    %cst_3 = arith.constant dense<0.000000e+00> : vector<8x1xf32>
    %14 = vector.multi_reduction <add>, %13, %cst_3 [2] : vector<8x1x16xf32> to vector<8x1xf32>
    %15 = tpu.concatenate %5, %10, %14 in 1 : vector<8x3xf32>, vector<8x2xf32>, vector<8x1xf32> -> vector<8x6xf32>
    %cst_4 = arith.constant 0.000000e+00 : f32
    %16 = vector.broadcast %cst_4 : f32 to vector<8x122xf32>
    %17 = tpu.concatenate %15, %16 in 1 : vector<8x6xf32>, vector<8x122xf32> -> vector<8x128xf32>
    %c0_5 = arith.constant 0 : index
    %c0_6 = arith.constant 0 : index
    %18 = vector.load %arg2[%c0_5, %c0_6] : memref<8x128xf32, #tpu.memory_space<vmem>>, vector<8x128xf32>
    tpu.vector_store %arg2[%c0_5, %c0_6], %17 {strides = array<i32>} : memref<8x128xf32, #tpu.memory_space<vmem>>, vector<8x128xf32>,
    return
  }
  func.func @transform_0(%arg0: i32) -> (i32, i32, i32) {
    %c0_i32 = arith.constant 0 : i32
    %c0_i32_0 = arith.constant 0 : i32
    %c0_i32_1 = arith.constant 0 : i32
    return %arg0, %c0_i32, %c0_i32_0 : i32, i32, i32
  }
  func.func @transform_1(%arg0: i32) -> (i32, i32) {
    %c0_i32 = arith.constant 0 : i32
    %c0_i32_0 = arith.constant 0 : i32
    return %arg0, %c0_i32 : i32, i32
  }
}

</mosaic_0001>

<bundles_post_ra>
// kernel: tpu_custom_call.1
= control target key start
LH: loop header
LB: loop body
LE: loop exit
PB: predicated region body
PF: predicated region fallthrough
CT: control target
= control target key end

     0   :  { %6 = vsyncpa [#allocation3], 0  ;;  %s992_s0 = inlined_call_operand.hbm [shape: f32[16,4,16], index: 0, kind: input, shape index: {}]   ;;  %s993_s1 = inlined_call_operand.hbm [shape: f32[16,128], index: 1, kind: output, shape index: {}]  }
   0x1   :  { %8 = vsyncpa [#allocation3 + $0x1], 0 }
   0x2   :  { %9 = vsyncpa [#allocation4], 0 }
   0x3   :  { %11 = vsyncpa [#allocation4 + $0x1], 0  ;;  %s729_s6 = smov 0   ;;  %s731_s7 = smov 0  }
   0x4   :  { %s733_s8 = smov 0   ;;  %s735_s9 = smov 0  }
   0x5 LB: > { %s750_s10 = sadd.s32 4294967295, %s713_s9   ;;  %s555_s11 = sadd.s32 4294967294, %s713_s9   ;;  %s713_s9 = sphi %s735_s9, %s1006_s9   ;;  %s709_s8 = sphi %s733_s8, %s1005_s8   ;;  %s705_s7 = sphi %s731_s7, %s1004_s7   ;;  %s701_s6 = sphi %s729_s6, %s1003_s6  }
   0x6   : > { %s754_s12 = sadd.s32 1, %s713_s9   ;;  %s24_s13 = sadd.s32 1, %s709_s8 }
   0x7   : > { %s21_s14 = ssub.s32 %s713_s9, %s754_s12  ;;  %p31_p0 = scmp.ne.s32.totalorder %s709_s8, %s705_s7 }
   0x8   : > { %p22_p1 = scmp.eq.s32.totalorder %s21_s14, 0  ;;  %p32_p2 = scmp.eq.s32.totalorder %s713_s9, 0 }
   0x9   : > { %p37_p3 = scmp.ne.s32.totalorder %s705_s7, %s701_s6  ;;  %p38_p4 = scmp.eq.s32.totalorder %s750_s10, 0 }
   0xa   : > { %s766_s15 = scalar_select %p22_p1, %s709_s8, %s24_s13  }
   0xb   : > { %p768_p5 = por %p32_p2, %p31_p0  ;;  %p772_p6 = por %p38_p4, %p37_p3 }
   0xc   : > { %p61_p7 = scmp.eq.s32.totalorder %s750_s10, 1  ;;  %p67_p8 = scmp.eq.s32.totalorder %s555_s11, 1 }
   0xd   : > { %p581_p10 = scmp.lt.s32.totalorder %s713_s9, 2  ;;  %s87_s20 = sand.u32 1, %s709_s8  }
   0xe   : > { %p779_p11 = por %p61_p7, %p31_p0  ;;  %p783_p12 = por %p67_p8, %p37_p3 }
   0xf   : > { %s568_s21 = sshll.u32 %s713_s9, 9  ;;  %s558_s22 = sshll.u32 %s87_s20, 5 }
  0x10   : > { %s997_s18 = scalar_select %p779_p11, 1, 0 }
  0x11   : > { %s998_s19 = scalar_select %p783_p12, 1, 0 }
  0x12   : > { %s792_s25 = scalar_lea.hbm %s992_s0, %s568_s21  ;;  %s91_s26 = scalar_lea.vmem [#allocation2], %s558_s22 }
  0x13   : > { %s98_s27 = sshll.u32 %s91_s26, 4  ;;  %p796_p13 = pnand %p581_p10, %p768_p5  ;;  %s800_s27 = int_to_ptr.vmem [resolvable:$true] %s98_s27 }
  0x14   : > { %s802_s29 = scalar_lea.sflag [#allocation3], %s87_s20  ;;  %s617_s30 = scalar_lea.hbm %s792_s25, 512 }
  0x15   : > { %p618_p0 = scmp.ne.s32.totalorder %s792_s25, %s617_s30  ;;  %p619_p1 = pneg %p796_p13 }
  0x16   : > { %s622_s4 = scalar_lea.hbm %s992_s0, 1024  ;;  %p623_p4 = scmp.lt.u32.totalorder %s792_s25, %s992_s0 }
  0x17   : > { %p620_p2 = pnand %p619_p1, %p618_p0  ;;  %p624_p5 = scmp.lt.u32.totalorder %s622_s4, %s617_s30 }
  0x18   : > { %p626_p8 = scmp.lt.u32.totalorder %s617_s30, %s792_s25 }
  0x19   : > { %p621_p3 = pneg %p620_p2  ;;  %p625_p7 = por %p624_p5, %p623_p4 }
  0x1b   : > { %p627_p10 = por %p626_p8, %p625_p7 }
  0x1d   : > { %p628_p9 = pnand %p627_p10, %p621_p3 }
  0x1f   : > { %631 = shalt.err (!%p628_p9)
}
  0x20   : > { %s632_s13 = scalar_lea.vmem %s800_s27, 512  ;;  %s715_s14 = smov [#allocation2]  }
  0x21   : > { %p633_p0 = scmp.ne.s32.totalorder %s800_s27, %s632_s13  ;;  %s637_s16 = sshll.u32 %s715_s14, 4  ;;  %s638_s16 = int_to_ptr.vmem [resolvable:$false] %s637_s16 }
  0x22   : > { %s639_s20 = scalar_lea.vmem %s638_s16, 1024  ;;  %p640_p11 = scmp.lt.s32.totalorder %s800_s27, %s638_s16 }
  0x23   : > { %p635_p2 = pnand %p633_p0, %p619_p1  ;;  %p641_p4 = scmp.lt.s32.totalorder %s639_s20, %s632_s13 }
  0x25   : > { %p636_p12 = pneg %p635_p2  ;;  %p642_p5 = por %p641_p4, %p640_p11 }
  0x27   : > { %p643_p7 = pnand %p642_p5, %p636_p12 }
  0x29   : > { %646 = shalt.err (!%p643_p7)
}
  0x2a   : > { %s716_s21 = smov 64   ;;  %s717_s22 = smov 4  }
  0x2b   : > { %576 = dma.hbm_to_vmem [thread:$0]  (!%p796_p13), %s792_s25, 512, %s800_s27, %s802_s29, %s716_s21, %s716_s21, %s717_s22  }
  0x2c   : > { %p561_p9 = scmp.ge.s32.totalorder %s713_s9, 1  ;;  %p106_p1 = scmp.lt.s32.totalorder %s713_s9, 3 }
  0x2e   : > { %p107_p3 = pnand %p561_p9, %p106_p1 }
  0x2f   : > { %s833_s23 = sand.u32 (!%p107_p3), 1, %s705_s7  }
  0x30   : > { %110 = sbr.rel (%p107_p3) target bundleno = 272 (0x110), region = 24  ;;  %s562_s24 = sshll.u32 (!%p107_p3), %s833_s23, 5 }
  0x31   : > { %s113_s26 = scalar_lea.sflag (!%p107_p3), [#allocation3], %s833_s23  ;;  %s837_s30 = scalar_lea.vmem (!%p107_p3), [#allocation2], %s562_s24 }
  0x37   : > { %692 = dma.done.wait (%p772_p6), %s113_s26, 512  }
  0x38   : > { %694 = vsyncadd (%p772_p6), %s113_s26, 4294966784  ;;  %v144_v0 = vlaneseq  ;;  %v136_v7 = vld [vmem:[%s837_s30] sm:$0xf]  ;;  %v137_v8 = vld [vmem:[%s837_s30 + $0x4] sm:$0xf]  ;;  %vm249_vm0 = vcmask 125954  }
  0x39   : > { %v852_v9 = vld [vmem:[%s837_s30 + $0x8] sm:$0xf]  ;;  %vm184_vm1 = vcmask 125953   ;;  %v283_v22 = vrot.slane %v137_v8, 7  ;;  %v282_v23 = vrot.slane %v136_v7, 7  ;;  %vm306_vm2 = vcmask 125955  }
  0x3a   : > { %v145_v1 = vshrl.u32 %v144_v0, 7  ;;  %v340_v2 = vand.u32 127, %v144_v0  ;;  %v139_v28 = vld [vmem:[%s837_s30 + $0xc] sm:$0xf]  ;;  %v140_v35 = vld [vmem:[%s837_s30 + $0x10] sm:$0xf] }
  0x3b   : > { %v299_v29 = vmul.f32 %v283_v22, %v137_v8  ;;  %v298_v30 = vmul.f32 %v282_v23, %v136_v7  ;;  %v141_v42 = vld [vmem:[%s837_s30 + $0x14] sm:$0xf]  ;;  %v285_v46 = vrot.slane %v139_v28, 7  ;;  %v284_v51 = vrot.slane %v852_v9, 7  ;;  %v142_v57 = vld [vmem:[%s837_s30 + $0x18] sm:$0xf] }
  0x3c   : > { %v843_v3 = vsub.s32 1, %v145_v1  ;;  %v845_v4 = vsub.s32 0, %v145_v1  ;;  %v396_v5 = vadd.s32 4294967295, %v340_v2  ;;  %v341_v43 = vadd.s32 1, %v340_v2  ;;  %s563_s17 = sshll.u32 %s833_s23, 3  ;;  %s565_s25 = sshll.u32 %s750_s10, 7 }
  0x3d   : > { %v310_v36 = vsel %vm306_vm2, %v299_v29, 0.0  ;;  %v307_v38 = vsel %vm306_vm2, %v298_v30, 0.0  ;;  %v301_v56 = vmul.f32 %v285_v46, %v139_v28  ;;  %v300_v58 = vmul.f32 %v284_v51, %v852_v9  ;;  %s134_s27 = scalar_lea.vmem [#allocation5], %s563_s17  ;;  %s948_s3 = scalar_lea.hbm %s993_s1, %s565_s25 }
  0x3e   : > { %v847_v6 = vsub.s32 %v396_v5, %v145_v1  ;;  %v212_v10 = vrot.slane %v136_v7, %v843_v3  ;;  %v147_v11 = vrot.slane %v136_v7, %v845_v4  ;;  %v216_v12 = vrot.slane %v137_v8, %v843_v3  ;;  %s485_s28 = sshll.u32 %s134_s27, 4  ;;  %s472_s10 = scalar_lea.sflag [#allocation4], %s833_s23  ;;  %s950_s28 = int_to_ptr.vmem [resolvable:$true] %s485_s28 }
  0x3f   : > { %v151_v13 = vrot.slane %v137_v8, %v845_v4  ;;  %v220_v14 = vrot.slane %v852_v9, %v843_v3  ;;  %v155_v15 = vrot.slane %v852_v9, %v845_v4  ;;  %v224_v33 = vrot.slane %v139_v28, %v843_v3  ;;  %s647_s4 = scalar_lea.vmem %s950_s28, 128  ;;  %p1000_p11 = scmp.ne.s32.totalorder %s997_s18, 0 }
  0x40   : > { %v241_v16 = vmul.f32 %v212_v10, %v136_v7  ;;  %v176_v17 = vmul.f32 %v147_v11, %v136_v7  ;;  %v242_v18 = vmul.f32 %v216_v12, %v137_v8  ;;  %v159_v34 = vrot.slane %v139_v28, %v845_v4  ;;  %p648_p6 = scmp.ne.s32.totalorder %s950_s28, %s647_s4  ;;  %s718_s5 = smov [#allocation5]  }
  0x41   : > { %v177_v19 = vmul.f32 %v151_v13, %v137_v8  ;;  %v243_v26 = vmul.f32 %v220_v14, %v852_v9  ;;  %v178_v27 = vmul.f32 %v155_v15, %v852_v9  ;;  %v228_v37 = vrot.slane %v140_v35, %v843_v3  ;;  %v143_v9 = vld [vmem:[%s837_s30 + $0x1c] sm:$0xf]  ;;  %s651_s11 = sshll.u32 %s718_s5, 4  ;;  %s652_s11 = int_to_ptr.vmem [resolvable:$false] %s651_s11 }
  0x42   : > { %v250_v20 = vsel %vm249_vm0, %v241_v16, 0.0  ;;  %v185_v21 = vsel %vm184_vm1, %v176_v17, 0.0  ;;  %v253_v24 = vsel %vm249_vm0, %v242_v18, 0.0  ;;  %v244_v39 = vmul.f32 %v224_v33, %v139_v28  ;;  %p649_p12 = pnand %p648_p6, %p1000_p11  ;;  %s653_s13 = scalar_lea.vmem %s652_s11, 256 }
  0x43   : > { %251 = vadd.xlane.f32.xlu1 %v250_v20  ;;  %186 = vadd.xlane.f32.xlu0 %v185_v21  ;;  %v188_v25 = vsel %vm184_vm1, %v177_v19, 0.0  ;;  %v256_v31 = vsel %vm249_vm0, %v243_v26, 0.0  ;;  %v191_v32 = vsel %vm184_vm1, %v178_v27, 0.0  ;;  %v179_v40 = vmul.f32 %v159_v34, %v139_v28  ;;  %p654_p8 = scmp.lt.s32.totalorder %s950_s28, %s652_s11  ;;  %p655_p10 = scmp.lt.s32.totalorder %s653_s13, %s647_s4 }
  0x44   : > { %v163_v41 = vrot.slane %v140_v35, %v845_v4  ;;  %v245_v44 = vmul.f32 %v228_v37, %v140_v35  ;;  %v167_v45 = vrot.slane %v141_v42, %v845_v4  ;;  %v259_v47 = vsel %vm249_vm0, %v244_v39, 0.0  ;;  %p650_p13 = pneg %p649_p12 }
  0x45   : > { %v194_v48 = vsel %vm184_vm1, %v179_v40, 0.0  ;;  %v882_v50 = vsub.s32 %v341_v43, %v145_v1  ;;  %v232_v52 = vrot.slane %v141_v42, %v843_v3  ;;  %v286_v59 = vrot.slane %v140_v35, 7  ;;  %p656_p0 = por %p655_p10, %p654_p8 }
  0x46   : > { %v180_v49 = vmul.f32 %v163_v41, %v140_v35  ;;  %v262_v53 = vsel %vm249_vm0, %v245_v44, 0.0  ;;  %v181_v55 = vmul.f32 %v167_v45, %v141_v42  ;;  %v316_v61 = vsel %vm306_vm2, %v301_v56, 0.0 }
  0x47   : > { %254 = vadd.xlane.f32.xlu1 %v253_v24  ;;  %189 = vadd.xlane.f32.xlu0 %v188_v25  ;;  %v246_v62 = vmul.f32 %v232_v52, %v141_v42  ;;  %v171_v63 = vrot.slane %v142_v57, %v845_v4  ;;  %v313_v0 = vsel %vm306_vm2, %v300_v58, 0.0  ;;  %v302_v1 = vmul.f32 %v286_v59, %v140_v35  ;;  %p657_p2 = pnand %p656_p0, %p650_p13 }
  0x48   : > { %v197_v54 = vsel %vm184_vm1, %v180_v49, 0.0  ;;  %v200_v60 = vsel %vm184_vm1, %v181_v55, 0.0  ;;  %v287_v7 = vrot.slane %v141_v42, 7  ;;  %v236_v8 = vrot.slane %v142_v57, %v843_v3 }
  0x49   : > { %v265_v2 = vsel %vm249_vm0, %v246_v62, 0.0  ;;  %v182_v5 = vmul.f32 %v171_v63, %v142_v57  ;;  %v240_v10 = vrot.slane %v143_v9, %v843_v3  ;;  %v175_v11 = vrot.slane %v143_v9, %v845_v4 }
  0x4a   : > { %v319_v13 = vsel %vm306_vm2, %v302_v1, 0.0  ;;  %v303_v14 = vmul.f32 %v287_v7, %v141_v42  ;;  %v247_v15 = vmul.f32 %v236_v8, %v142_v57  ;;  %v289_v17 = vrot.slane %v143_v9, 7 }
  0x4b   : > { %257 = vadd.xlane.f32.xlu1 %v256_v31  ;;  %192 = vadd.xlane.f32.xlu0 %v191_v32  ;;  %v203_v12 = vsel %vm184_vm1, %v182_v5, 0.0  ;;  %v248_v16 = vmul.f32 %v240_v10, %v143_v9  ;;  %v183_v20 = vmul.f32 %v175_v11, %v143_v9  ;;  %v288_v21 = vrot.slane %v142_v57, 7 }
  0x4c   : > { %v322_v18 = vsel %vm306_vm2, %v303_v14, 0.0  ;;  %v268_v19 = vsel %vm249_vm0, %v247_v15, 0.0  ;;  %v305_v22 = vmul.f32 %v289_v17, %v143_v9  ;;  %vm374_vm3 = vcmask 1042434  }
  0x4d   : > { %v271_v3 = vsel %vm249_vm0, %v248_v16, 0.0  ;;  %v206_v4 = vsel %vm184_vm1, %v183_v20, 0.0  ;;  %v304_v23 = vmul.f32 %v288_v21, %v142_v57  ;;  %vm376_vm4 = vcmask 1043459  }
  0x4e   : > { %v328_v24 = vsel %vm306_vm2, %v305_v22, 0.0  ;;  %vm378_vm5 = vcmask 1044484   ;;  %vm380_vm6 = vcmask 1045509   ;;  %vm382_vm7 = vcmask 1046534  }
  0x4f   : > { %311 = vadd.xlane.f32.xlu1 %v310_v36  ;;  %308 = vadd.xlane.f32.xlu0 %v307_v38  ;;  %v325_v25 = vsel %vm306_vm2, %v304_v23, 0.0  ;;  %vm384_vm8 = vcmask 1047559   ;;  %vm460_vm9 = vcmask 23552   ;;  %vm463_vm10 = vcmask 39936  }
  0x50   : > { %vm466_vm11 = vcmask 48128  }
  0x53   : > { %260 = vadd.xlane.f32.xlu1 %v259_v47  ;;  %195 = vadd.xlane.f32.xlu0 %v194_v48 }
  0x57   : > { %263 = vadd.xlane.f32.xlu1 %v262_v53  ;;  %198 = vadd.xlane.f32.xlu0 %v197_v54 }
  0x5b   : > { %201 = vadd.xlane.f32.xlu1 %v200_v60  ;;  %317 = vadd.xlane.f32.xlu0 %v316_v61 }
  0x5f   : > { %314 = vadd.xlane.f32.xlu1 %v313_v0  ;;  %266 = vadd.xlane.f32.xlu0 %v265_v2 }
  0x63   : > { %204 = vadd.xlane.f32.xlu1 %v203_v12  ;;  %320 = vadd.xlane.f32.xlu0 %v319_v13 }
  0x67   : > { %323 = vadd.xlane.f32.xlu1 %v322_v18  ;;  %269 = vadd.xlane.f32.xlu0 %v268_v19 }
  0x6b   : > { %272 = vadd.xlane.f32.xlu1 %v271_v3  ;;  %207 = vadd.xlane.f32.xlu0 %v206_v4 }
  0x6f   : > { %329 = vadd.xlane.f32.xlu1 %v328_v24  ;;  %326 = vadd.xlane.f32.xlu0 %v325_v25 }
  0xd0   : > { %v252_v26 = vpop.xlane.xlu1 %251  ;;  %v187_v27 = vpop.xlane.xlu0 %186 }
  0xd1   : > { %v400_v46 = vrot.slane %v252_v26, %v847_v6  ;;  %v345_v47 = vrot.slane %v187_v27, %v882_v50 }
  0xd4   : > { %v255_v28 = vpop.xlane.xlu1 %254  ;;  %v190_v29 = vpop.xlane.xlu0 %189 }
  0xd5   : > { %v404_v42 = vrot.slane %v255_v28, %v847_v6  ;;  %v349_v43 = vrot.slane %v190_v29, %v882_v50 }
  0xd7   : > { %v429_v55 = vsel %vm374_vm3, %v404_v42, %v400_v46  ;;  %v375_v56 = vsel %vm374_vm3, %v349_v43, %v345_v47 }
  0xd8   : > { %v258_v30 = vpop.xlane.xlu1 %257  ;;  %v193_v31 = vpop.xlane.xlu0 %192 }
  0xd9   : > { %v408_v44 = vrot.slane %v258_v30, %v847_v6  ;;  %v353_v45 = vrot.slane %v193_v31, %v882_v50 }
  0xdb   : > { %v430_v59 = vsel %vm376_vm4, %v408_v44, %v429_v55  ;;  %v377_v60 = vsel %vm376_vm4, %v353_v45, %v375_v56 }
  0xdc   : > { %v312_v32 = vpop.xlane.xlu1 %311  ;;  %v309_v33 = vpop.xlane.xlu0 %308 }
  0xdd   : > { %v446_v62 = vrot.slane %v312_v32, 1  ;;  %v445_v63 = vrot.slane %v309_v33, 2 }
  0xdf   : > { %v447_v14 = vsel %vm374_vm3, %v446_v62, %v445_v63 }
  0xe0   : > { %v261_v34 = vpop.xlane.xlu1 %260  ;;  %v196_v35 = vpop.xlane.xlu0 %195 }
  0xe1   : > { %v412_v48 = vrot.slane %v261_v34, %v847_v6  ;;  %v357_v49 = vrot.slane %v196_v35, %v882_v50 }
  0xe3   : > { %v431_v0 = vsel %vm378_vm5, %v412_v48, %v430_v59  ;;  %v379_v1 = vsel %vm378_vm5, %v357_v49, %v377_v60 }
  0xe4   : > { %v264_v36 = vpop.xlane.xlu1 %263  ;;  %v199_v37 = vpop.xlane.xlu0 %198 }
  0xe5   : > { %v416_v53 = vrot.slane %v264_v36, %v847_v6  ;;  %v361_v54 = vrot.slane %v199_v37, %v882_v50 }
  0xe7   : > { %v432_v7 = vsel %vm380_vm6, %v416_v53, %v431_v0  ;;  %v381_v8 = vsel %vm380_vm6, %v361_v54, %v379_v1 }
  0xe8   : > { %v202_v38 = vpop.xlane.xlu1 %201  ;;  %v318_v39 = vpop.xlane.xlu0 %317 }
  0xe9   : > { %v365_v57 = vrot.slane %v202_v38, %v882_v50  ;;  %v449_v3 = vrot.slane %v318_v39, 7 }
  0xeb   : > { %v383_v11 = vsel %vm382_vm7, %v365_v57, %v381_v8 }
  0xec   : > { %v315_v40 = vpop.xlane.xlu1 %314  ;;  %v267_v41 = vpop.xlane.xlu0 %266 }
  0xed   : > { %v420_v58 = vrot.slane %v267_v41, %v847_v6  ;;  %v448_v18 = vsel %vm376_vm4, %v315_v40, %v447_v14 }
  0xee   : > { %v450_v23 = vsel %vm378_vm5, %v449_v3, %v448_v18 }
  0xef   : > { %v433_v10 = vsel %vm382_vm7, %v420_v58, %v432_v7 }
  0xf0   : > { %v205_v51 = vpop.xlane.xlu1 %204  ;;  %v321_v52 = vpop.xlane.xlu0 %320 }
  0xf1   : > { %v369_v61 = vrot.slane %v205_v51, %v882_v50  ;;  %v451_v19 = vrot.slane %v321_v52, 6 }
  0xf3   : > { %v385_v12 = vsel %vm384_vm8, %v369_v61, %v383_v11  ;;  %v452_v26 = vsel %vm380_vm6, %v451_v19, %v450_v23 }
  0xf4   : > { %v324_v2 = vpop.xlane.xlu1 %323  ;;  %v270_v5 = vpop.xlane.xlu0 %269 }
  0xf5   : > { %v424_v9 = vrot.slane %v270_v5, %v847_v6  ;;  %v453_v4 = vrot.slane %v324_v2, 5 }
  0xf7   : > { %v434_v13 = vsel %vm384_vm8, %v424_v9, %v433_v10 }
  0xf8   : > { %v461_v15 = vsel %vm460_vm9, %v385_v12, %v434_v13  ;;  %v273_v16 = vpop.xlane.xlu1 %272  ;;  %v208_v17 = vpop.xlane.xlu0 %207 }
  0xf9   : > { %v428_v20 = vrot.slane %v273_v16, %v847_v6  ;;  %v373_v21 = vrot.slane %v208_v17, %v882_v50  ;;  %v454_v6 = vsel %vm382_vm7, %v453_v4, %v452_v26 }
  0xfb   : > { %v462_v22 = vsel %vm460_vm9, %v373_v21, %v428_v20 }
  0xfc   : > { %v330_v24 = vpop.xlane.xlu1 %329  ;;  %v327_v25 = vpop.xlane.xlu0 %326 }
  0xfd   : > { %v457_v27 = vrot.slane %v330_v24, 3  ;;  %v455_v28 = vrot.slane %v327_v25, 4 }
  0xff   : > { %v465_v50 = vsel %vm463_vm10, %v462_v22, %v457_v27  ;;  %v456_v29 = vsel %vm384_vm8, %v455_v28, %v454_v6 }
 0x100   : > { %v468_v30 = vsel %vm466_vm11, %v465_v50, 0.0  ;;  %v464_v31 = vsel %vm463_vm10, %v461_v15, %v456_v29 }
 0x101   : > { %470 = vst [vmem:[%s134_s27 + $0x7] sm:$0x1] %v468_v30  ;;  %v467_v32 = vsel %vm466_vm11, %v464_v31, 0.0 }
 0x102   : > { %469 = vst [vmem:[%s134_s27 - $0x1] sm:$0xfe] %v467_v32 }
 0x103   : > { %660 = shalt.err (!%p657_p2)
}
 0x104   : > { %s661_s14 = scalar_lea.hbm %s948_s3, 128  ;;  %s665_s21 = scalar_lea.hbm %s993_s1, 256 }
 0x105   : > { %p662_p4 = scmp.ne.s32.totalorder %s948_s3, %s661_s14  ;;  %p666_p9 = scmp.lt.u32.totalorder %s948_s3, %s993_s1 }
 0x106   : > { %p667_p1 = scmp.lt.u32.totalorder %s665_s21, %s661_s14  ;;  %p669_p6 = scmp.lt.u32.totalorder %s661_s14, %s948_s3 }
 0x107   : > { %p663_p5 = pnand %p662_p4, %p1000_p11 }
 0x108   : > { %p668_p3 = por %p667_p1, %p666_p9 }
 0x109   : > { %p664_p7 = pneg %p663_p5 }
 0x10a   : > { %p670_p12 = por %p669_p6, %p668_p3 }
 0x10c   : > { %p671_p13 = pnand %p670_p12, %p664_p7 }
 0x10e   : > { %674 = shalt.err (!%p671_p13)
}
 0x10f   : > { %571 = dma.vmem_to_hbm [thread:$0]  (%p1000_p11), %s950_s28, 128, %s948_s3, %s472_s10  }
 0x110 PF: > { %s497_s24 = sand.u32 1, %s701_s6   ;;  %p1001_p8 = scmp.ne.s32.totalorder %s998_s19, 0 }
 0x111   : > { %p1002_p10 = scmp.ge.s32.totalorder %s713_s9, 2  ;;  %s498_s26 = scalar_lea.sflag [#allocation4], %s497_s24 }
 0x113   : > { %p578_p0 = pnand %p1002_p10, %p1001_p8 }
 0x115   : > { %696 = dma.done.wait (!%p578_p0), %s498_s26, 128  }
 0x116   : > { %698 = vsyncadd (!%p578_p0), %s498_s26, 4294967168  ;;  %p14_p2 = scmp.ge.s32.totalorder %s754_s12, 4   ;;  %s1003_s6 = smov %s705_s7 }
 0x117   : > { %s1004_s7 = smov %s709_s8  ;;  %s1005_s8 = smov %s766_s15 }
 0x118   : > { %s1006_s9 = smov %s754_s12  ;;  %16 = sbr.rel (!%p14_p2) target bundleno = 5 (0x5), region = 69 }
 0x11f   :  { %503 = vsyncpa [#allocation3], 1 }
 0x120   :  { %505 = vsyncpa [#allocation3 + $0x1], 1 }
 0x121   :  { %506 = vsyncpa [#allocation4], 1 }
 0x122   :  { %508 = vsyncpa [#allocation4 + $0x1], 1 }

</bundles_post_ra>
